<compile_context>
chip_gen: v6e
topology: v6e:2x2x1
jax: 0.10.0
libtpu: 0.0.40
codegen_flags: <defaults>
</compile_context>

<pallas_src>
import jax
import jax.numpy as jnp
from jax.experimental import pallas as pl
from jax.experimental.pallas import tpu as pltpu


def _round_up(x, m):
    return ((x + m - 1) // m) * m


def _cdiv(a, b):
    return (a + b - 1) // b


def _pad2(x, rows, cols):
    pr, pc = rows - x.shape[0], cols - x.shape[1]
    if pr == 0 and pc == 0:
        return x
    return jnp.pad(x, ((0, pr), (0, pc)))


def _vmem_budget_bytes():
    # Per-generation VMEM budget: ~3/4 of physical capacity (96 MiB on
    # v5e/v6e, 48 MiB on v7x). Conservative 64 MiB fallback if the query fails.
    cap = 64 * 1024 * 1024
    try:
        info = pltpu.get_tpu_info()
        cap = int(getattr(info, "vmem_capacity_bytes", cap))
    except Exception:
        pass
    return (cap * 3) // 4


def gauss_ctroid_kernel(d_ref, wt_ref, g_ref, b_ref, o_ref, dsq_ref):
    k = pl.program_id(2)

    @pl.when(k == 0)
    def _():
        o_ref[...] = jnp.zeros_like(o_ref)
        dsq_ref[...] = jnp.zeros_like(dsq_ref)

    d = d_ref[...]
    # Cross term: accumulate D @ W^T straight into the resident f32 output block.
    o_ref[...] += jnp.dot(d, wt_ref[...], preferred_element_type=jnp.float32)
    # ||d||^2 row-sums from the same VMEM tile (no extra HBM traffic).
    d32 = d.astype(jnp.float32)
    dsq_ref[...] += jnp.sum(d32 * d32, axis=1, keepdims=True)

    @pl.when(k == pl.num_programs(2) - 1)
    def _():
        # out = gamma*(2*cross - ||d||^2) - gamma*||w||^2
        o_ref[...] = (g_ref[...] * (2.0 * o_ref[...] - dsq_ref[...])
                      + b_ref[...]).astype(o_ref.dtype)


def gauss_ctroid_forward(D, weight, gamma, *, tn=512, tc=512, tk=1024,
                         matmul_dtype=jnp.bfloat16, vmem_limit_bytes=None):
    """D: [N, K], weight: [C, K], gamma: [C] -> [N, C] float32."""
    N, K = D.shape
    C, K2 = weight.shape
    assert K == K2, "feature dims must match"

    op_dtype = jnp.dtype(matmul_dtype) if matmul_dtype is not None else jnp.dtype(D.dtype)
    op_itemsize = op_dtype.itemsize

    # ---- per-centroid constants (C-length, negligible) -----------------------
    w_f32 = weight.astype(jnp.float32)
    g_f32 = gamma.astype(jnp.float32)
    g_row = g_f32.reshape(1, C)                                         # (1, C)
    b_row = (-g_f32 * jnp.sum(w_f32 * w_f32, axis=1)).reshape(1, C)     # (1, C)

    wt = weight.T.astype(op_dtype)        # (K, C) matmul RHS (2x folded in-kernel)
    D_op = D.astype(op_dtype)

    # ---- tile selection -------------------------------------------------------
    Np0, Cp0, Kp0 = _round_up(N, 8), _round_up(C, 128), _round_up(K, 128)
    TN = _round_up(min(tn, Np0), 8)
    TC = _round_up(min(tc, Cp0), 128)
    TK = _round_up(min(tk, Kp0), 128)

    # Expose >=2 parallel (n, c) blocks when possible (v7x has 2 TensorCores).
    if _cdiv(Np0, TN) * _cdiv(Cp0, TC) < 2 and Np0 >= 16:
        TN = _round_up(_cdiv(Np0, 2), 8)

    if vmem_limit_bytes is None:
        vmem_limit_bytes = _vmem_budget_bytes()

    def working_set(tn_, tc_, tk_):
        return (2 * (tn_ * tk_ + tk_ * tc_) * op_itemsize   # double-buffered inputs
                + 2 * tn_ * tc_ * 4                          # f32 output block
                + tn_ * 4 + 4 * tc_ * 4)                     # dsq scratch + g/b rows

    # Shrink TK first (accumulate-in-place makes big TK least valuable), then TC/TN.
    while working_set(TN, TC, TK) > vmem_limit_bytes:
        if TK > 128:
            TK = max(128, _round_up(TK // 2, 128))
        elif TC > 128:
            TC = max(128, _round_up(TC // 2, 128))
        elif TN > 8:
            TN = max(8, _round_up(TN // 2, 8))
        else:
            break

    # ---- pad only when the tiles do not already divide the shapes ------------
    Np, Cp, Kp = _round_up(N, TN), _round_up(C, TC), _round_up(K, TK)
    D_p = _pad2(D_op, Np, Kp)
    wt_p = _pad2(wt, Kp, Cp)
    g_p = _pad2(g_row, 1, Cp)
    b_p = _pad2(b_row, 1, Cp)

    grid = (Np // TN, Cp // TC, Kp // TK)
    n_blk, c_blk = grid[0], grid[1]

    out_p = pl.pallas_call(
        gauss_ctroid_kernel,
        out_shape=jax.ShapeDtypeStruct((Np, Cp), jnp.float32),
        grid_spec=pltpu.PrefetchScalarGridSpec(
            num_scalar_prefetch=0,
            grid=grid,
            in_specs=[
                pl.BlockSpec((TN, TK), lambda n, c, k: (n, k)),   # D tile
                pl.BlockSpec((TK, TC), lambda n, c, k: (k, c)),   # W^T tile
                pl.BlockSpec((1, TC), lambda n, c, k: (0, c)),    # gamma
                pl.BlockSpec((1, TC), lambda n, c, k: (0, c)),    # -gamma*||w||^2
            ],
            out_specs=pl.BlockSpec((TN, TC), lambda n, c, k: (n, c)),
            scratch_shapes=[pltpu.VMEM((TN, 1), jnp.float32)],    # ||d||^2 accumulator
        ),
        compiler_params=pltpu.CompilerParams(
            dimension_semantics=("parallel", "parallel", "arbitrary"),
            vmem_limit_bytes=int(vmem_limit_bytes),
        ),
        cost_estimate=pl.CostEstimate(
            flops=2 * Np * Cp * Kp,
            transcendentals=0,
            # Account for actual re-streaming: D read once per C block, W^T once
            # per N block, output written once.
            bytes_accessed=int(Np * Kp * op_itemsize * c_blk
                               + Kp * Cp * op_itemsize * n_blk
                               + Np * Cp * 4 + 4 * Cp * 4),
        ),
    )(D_p, wt_p, g_p, b_p)

    if Np == N and Cp == C:
        return out_p
    return out_p[:N, :C]


def gauss_ctroid_reference(D, weight, gamma):
    # out = D.unsqueeze(2) - weight.t().unsqueeze(0); -gamma * sum(out**2, 1)
    diff = D[:, :, None] - weight.T[None, :, :]             # (N, K, C)
    return -gamma[None, :] * jnp.sum(diff * diff, axis=1)   # (N, C)


if __name__ == "__main__":
    key = jax.random.PRNGKey(0)
    k_d, k_w, k_d2, k_w2, k_d3, k_w3 = jax.random.split(key, 6)

    # 1) Module-like small shapes; f32 matmul path, strict tolerance.
    N, in_features, out_features, gamma_init = 8, 32, 16, 0.5
    D = jax.random.normal(k_d, (N, in_features), dtype=jnp.float32)
    weight = 0.1 * jax.random.normal(
        k_w, (out_features, in_features), dtype=jnp.float32)
    gamma = gamma_init * jnp.ones((out_features,), dtype=jnp.float32)

    out = jax.block_until_ready(
        gauss_ctroid_forward(D, weight, gamma, matmul_dtype=jnp.float32))
    ref = gauss_ctroid_reference(D, weight, gamma)
    assert out.shape == (N, out_features)
    assert jnp.allclose(out, ref, atol=1e-4, rtol=1e-4), "mismatch vs reference"

    # 2) Non-divisible shapes + small tiles so every grid axis has multiple steps
    #    (exercises init/epilogue, in-kernel dsq accumulation and padding paths).
    N2, K2, C2 = 24, 200, 130
    D2 = jax.random.normal(k_d2, (N2, K2), dtype=jnp.float32)
    W2 = 0.2 * jax.random.normal(k_w2, (C2, K2), dtype=jnp.float32)
    g2 = jnp.linspace(0.1, 2.0, C2, dtype=jnp.float32)

    out2 = jax.block_until_ready(
        gauss_ctroid_forward(D2, W2, g2, tn=8, tc=128, tk=128,
                             matmul_dtype=jnp.float32))
    ref2 = gauss_ctroid_reference(D2, W2, g2)
    assert out2.shape == (N2, C2)
    assert jnp.allclose(out2, ref2, atol=1e-3, rtol=1e-3), "mismatch (tiled grid)"

    # 3) Default bf16 MXU fast path (auto tiles, megacore split), looser tolerance.
    N3, K3, C3 = 64, 256, 192
    D3 = jax.random.normal(k_d3, (N3, K3), dtype=jnp.float32)
    W3 = 0.1 * jax.random.normal(k_w3, (C3, K3), dtype=jnp.float32)
    g3 = jnp.linspace(0.1, 2.0, C3, dtype=jnp.float32)

    out3 = jax.block_until_ready(gauss_ctroid_forward(D3, W3, g3))
    ref3 = gauss_ctroid_reference(D3, W3, g3)
    assert out3.shape == (N3, C3)
    assert jnp.allclose(out3, ref3, rtol=5e-2, atol=1.0), "mismatch (bf16 path)"

    print("KERNEL_OK")
</pallas_src>

<mosaic_0001>
module attributes {stable_mosaic.version = 11 : i64} {
  func.func @gauss_ctroid_kernel(%arg0: i32, %arg1: i32, %arg2: i32, %arg3: memref<8x128xf32, #tpu.memory_space<vmem>>, %arg4: memref<128x128xf32, #tpu.memory_space<vmem>>, %arg5: memref<1x128xf32, #tpu.memory_space<vmem>>, %arg6: memref<1x128xf32, #tpu.memory_space<vmem>>, %arg7: memref<8x128xf32, #tpu.memory_space<vmem>>, %arg8: memref<8x1xf32, #tpu.memory_space<vmem>>) attributes {dimension_semantics = [#tpu.dimension_semantics<parallel>, #tpu.dimension_semantics<parallel>, #tpu.dimension_semantics<arbitrary>], iteration_bounds = array<i64: 1, 1, 1>, scalar_prefetch = 0 : i64, scratch_operands = 1 : i64, tpu.core_type = #tpu.core_type<tc>, window_params = [{transform_indices = @transform_0, window_bounds = array<i64: 8, 128>}, {transform_indices = @transform_1, window_bounds = array<i64: 128, 128>}, {transform_indices = @transform_2, window_bounds = array<i64: 1, 128>}, {transform_indices = @transform_3, window_bounds = array<i64: 1, 128>}, {transform_indices = @transform_4, window_bounds = array<i64: 8, 128>}]} {
    %c0_i32 = arith.constant 0 : i32
    %0 = arith.cmpi eq, %arg2, %c0_i32 : i32
    %1 = arith.extui %0 : i1 to i32
    %c0_i32_0 = arith.constant 0 : i32
    %2 = arith.cmpi ne, %1, %c0_i32_0 : i32
    scf.if %2 {
      %cst_15 = arith.constant 0.000000e+00 : f32
      %18 = vector.broadcast %cst_15 : f32 to vector<8x128xf32>
      %c0_16 = arith.constant 0 : index
      %c0_17 = arith.constant 0 : index
      %19 = vector.load %arg7[%c0_16, %c0_17] : memref<8x128xf32, #tpu.memory_space<vmem>>, vector<8x128xf32>
      tpu.vector_store %arg7[%c0_16, %c0_17], %18 {strides = array<i32>} : memref<8x128xf32, #tpu.memory_space<vmem>>, vector<8x128xf32>,
      %cst_18 = arith.constant 0.000000e+00 : f32
      %20 = vector.broadcast %cst_18 : f32 to vector<8x1xf32>
      %c0_19 = arith.constant 0 : index
      %c0_20 = arith.constant 0 : index
      %21 = vector.load %arg8[%c0_19, %c0_20] : memref<8x1xf32, #tpu.memory_space<vmem>>, vector<8x1xf32>
      tpu.vector_store %arg8[%c0_19, %c0_20], %20 {strides = array<i32>} : memref<8x1xf32, #tpu.memory_space<vmem>>, vector<8x1xf32>,
    } else {
    }
    %c0 = arith.constant 0 : index
    %c0_1 = arith.constant 0 : index
    %3 = vector.load %arg3[%c0, %c0_1] : memref<8x128xf32, #tpu.memory_space<vmem>>, vector<8x128xf32>
    %c0_2 = arith.constant 0 : index
    %c0_3 = arith.constant 0 : index
    %4 = vector.load %arg7[%c0_2, %c0_3] : memref<8x128xf32, #tpu.memory_space<vmem>>, vector<8x128xf32>
    %c0_4 = arith.constant 0 : index
    %c0_5 = arith.constant 0 : index
    %5 = vector.load %arg4[%c0_4, %c0_5] : memref<128x128xf32, #tpu.memory_space<vmem>>, vector<128x128xf32>
    %cst = arith.constant dense<0.000000e+00> : vector<8x128xf32>
    %6 = tpu.matmul %3, %5, %cst {dimension_numbers = #tpu.dot_dimension_numbers<[1], [0], [0], [1], [0, 0, 1, 1], [], []>} : vector<8x128xf32>, vector<128x128xf32>, vector<8x128xf32> -> vector<8x128xf32>
    %7 = arith.addf %4, %6 : vector<8x128xf32>
    %c0_6 = arith.constant 0 : index
    %c0_7 = arith.constant 0 : index
    %8 = vector.load %arg7[%c0_6, %c0_7] : memref<8x128xf32, #tpu.memory_space<vmem>>, vector<8x128xf32>
    tpu.vector_store %arg7[%c0_6, %c0_7], %7 {strides = array<i32>} : memref<8x128xf32, #tpu.memory_space<vmem>>, vector<8x128xf32>,
    %c0_8 = arith.constant 0 : index
    %c0_9 = arith.constant 0 : index
    %9 = vector.load %arg8[%c0_8, %c0_9] : memref<8x1xf32, #tpu.memory_space<vmem>>, vector<8x1xf32>
    %10 = arith.mulf %3, %3 : vector<8x128xf32>
    %cst_10 = arith.constant dense<0.000000e+00> : vector<8xf32>
    %11 = vector.multi_reduction <add>, %10, %cst_10 [1] : vector<8x128xf32> to vector<8xf32>
    %12 = vector.shape_cast %11 : vector<8xf32> to vector<8x1xf32>
    %13 = arith.addf %9, %12 : vector<8x1xf32>
    %c0_11 = arith.constant 0 : index
    %c0_12 = arith.constant 0 : index
    %14 = vector.load %arg8[%c0_11, %c0_12] : memref<8x1xf32, #tpu.memory_space<vmem>>, vector<8x1xf32>
    tpu.vector_store %arg8[%c0_11, %c0_12], %13 {strides = array<i32>} : memref<8x1xf32, #tpu.memory_space<vmem>>, vector<8x1xf32>,
    %c0_i32_13 = arith.constant 0 : i32
    %15 = arith.cmpi eq, %arg2, %c0_i32_13 : i32
    %16 = arith.extui %15 : i1 to i32
    %c0_i32_14 = arith.constant 0 : i32
    %17 = arith.cmpi ne, %16, %c0_i32_14 : i32
    scf.if %17 {
      %c0_15 = arith.constant 0 : index
      %c0_16 = arith.constant 0 : index
      %18 = vector.load %arg5[%c0_15, %c0_16] : memref<1x128xf32, #tpu.memory_space<vmem>>, vector<1x128xf32>
      %c0_17 = arith.constant 0 : index
      %c0_18 = arith.constant 0 : index
      %19 = vector.load %arg7[%c0_17, %c0_18] : memref<8x128xf32, #tpu.memory_space<vmem>>, vector<8x128xf32>
      %cst_19 = arith.constant 2.000000e+00 : f32
      %20 = vector.broadcast %cst_19 : f32 to vector<8x128xf32>
      %21 = arith.mulf %20, %19 : vector<8x128xf32>
      %c0_20 = arith.constant 0 : index
      %c0_21 = arith.constant 0 : index
      %22 = vector.load %arg8[%c0_20, %c0_21] : memref<8x1xf32, #tpu.memory_space<vmem>>, vector<8x1xf32>
      %23 = vector.broadcast %22 : vector<8x1xf32> to vector<8x128xf32>
      %24 = arith.subf %21, %23 : vector<8x128xf32>
      %25 = vector.broadcast %18 : vector<1x128xf32> to vector<8x128xf32>
      %26 = arith.mulf %25, %24 : vector<8x128xf32>
      %c0_22 = arith.constant 0 : index
      %c0_23 = arith.constant 0 : index
      %27 = vector.load %arg6[%c0_22, %c0_23] : memref<1x128xf32, #tpu.memory_space<vmem>>, vector<1x128xf32>
      %28 = vector.broadcast %27 : vector<1x128xf32> to vector<8x128xf32>
      %29 = arith.addf %26, %28 : vector<8x128xf32>
      %c0_24 = arith.constant 0 : index
      %c0_25 = arith.constant 0 : index
      %30 = vector.load %arg7[%c0_24, %c0_25] : memref<8x128xf32, #tpu.memory_space<vmem>>, vector<8x128xf32>
      tpu.vector_store %arg7[%c0_24, %c0_25], %29 {strides = array<i32>} : memref<8x128xf32, #tpu.memory_space<vmem>>, vector<8x128xf32>,
    } else {
    }
    return
  }
  func.func @transform_0(%arg0: i32, %arg1: i32, %arg2: i32) -> (i32, i32) {
    %c0_i32 = arith.constant 0 : i32
    return %arg0, %arg2 : i32, i32
  }
  func.func @transform_1(%arg0: i32, %arg1: i32, %arg2: i32) -> (i32, i32) {
    %c0_i32 = arith.constant 0 : i32
    return %arg2, %arg1 : i32, i32
  }
  func.func @transform_2(%arg0: i32, %arg1: i32, %arg2: i32) -> (i32, i32) {
    %c0_i32 = arith.constant 0 : i32
    %c0_i32_0 = arith.constant 0 : i32
    return %c0_i32, %arg1 : i32, i32
  }
  func.func @transform_3(%arg0: i32, %arg1: i32, %arg2: i32) -> (i32, i32) {
    %c0_i32 = arith.constant 0 : i32
    %c0_i32_0 = arith.constant 0 : i32
    return %c0_i32, %arg1 : i32, i32
  }
  func.func @transform_4(%arg0: i32, %arg1: i32, %arg2: i32) -> (i32, i32) {
    %c0_i32 = arith.constant 0 : i32
    return %arg0, %arg1 : i32, i32
  }
}

</mosaic_0001>

<bundles_post_ra>
// kernel: tpu_custom_call.1
= control target key start
LH: loop header
LB: loop body
LE: loop exit
PB: predicated region body
PF: predicated region fallthrough
CT: control target
= control target key end

     0   :  { %9 = vsyncpa [#allocation4], 0  ;;  %s372_s0 = inlined_call_operand.hbm [shape: f32[8,128], index: 0, kind: input, shape index: {}]   ;;  %s373_s1 = inlined_call_operand.hbm [shape: f32[128,128], index: 1, kind: input, shape index: {}]   ;;  %s374_s2 = inlined_call_operand.vmem [shape: f32[1,128], index: 2, kind: input, shape index: {}]   ;;  %s375_s3 = inlined_call_operand.vmem [shape: f32[1,128], index: 3, kind: input, shape index: {}]   ;;  %s376_s4 = inlined_call_operand.hbm [shape: f32[8,128], index: 4, kind: output, shape index: {}]  }
   0x1   :  { %10 = vsyncpa [#allocation7], 0 }
   0x2   :  { %11 = vsyncpa [#allocation5], 0  ;;  %s322_s15 = smov [#allocation3]   ;;  %s323_s17 = smov [#allocation6]  }
   0x3   :  { %s18_s16 = sshll.u32 %s322_s15, 4  ;;  %s27_s18 = sshll.u32 %s323_s17, 4  ;;  %s19_s16 = int_to_ptr.vmem [resolvable:$true] %s18_s16  ;;  %s28_s18 = int_to_ptr.vmem [resolvable:$true] %s27_s18 }
   0x4   :  { %s264_s19 = scalar_lea.vmem %s19_s16, 128  ;;  %p269_p1 = scmp.lt.s32.totalorder %s19_s16, %s19_s16 }
   0x5   :  { %p265_p0 = scmp.ne.s32.totalorder %s19_s16, %s264_s19  ;;  %p270_p2 = scmp.lt.s32.totalorder %s264_s19, %s264_s19 }
   0x7   :  { %p271_p3 = por %p270_p2, %p269_p1 }
   0x9   :  { %p272_p4 = pnand %p271_p3, %p265_p0 }
   0xb   :  { %275 = shalt.err (!%p272_p4)
}
   0xc   :  { %21 = dma.hbm_to_vmem [thread:$0]  %s372_s0, 128, %s19_s16, [#allocation4]  }
   0xd   :  { %s284_s22 = scalar_lea.vmem %s28_s18, 2048  ;;  %p289_p6 = scmp.lt.s32.totalorder %s28_s18, %s28_s18 }
   0xe   :  { %p285_p5 = scmp.ne.s32.totalorder %s28_s18, %s284_s22  ;;  %p290_p7 = scmp.lt.s32.totalorder %s284_s22, %s284_s22 }
  0x10   :  { %p291_p8 = por %p290_p7, %p289_p6 }
  0x12   :  { %p292_p9 = pnand %p291_p8, %p285_p5 }
  0x14   :  { %295 = shalt.err (!%p292_p9)
}
  0x15   :  { %s324_s23 = smov 128   ;;  %s325_s24 = smov 8  }
  0x16   :  { %33 = dma.hbm_to_vmem [thread:$0]  %s373_s1, 2048, %s28_s18, [#allocation7], %s324_s23, %s324_s23, %s325_s24  }
  0x17   :  { %316 = dma.done.wait [#allocation4], 128  }
  0x18   :  { %317 = vsyncadd [#allocation4], 4294967168 }
  0x19   :  { %318 = dma.done.wait [#allocation7], 2048  }
  0x1a   :  { %319 = vsyncadd [#allocation7], 4294965248  ;;  %vm49_vm0 = vcmask 7168   ;;  %v326_v0 = vmov 0.0   ;;  %vm327_vm1 = vmmov 0   ;;  %v51_v1 = vld [vmem:[#allocation3] sm:$0xff] }
  0x1b   :  { %212 = vmatprep.subr.mxu0 %v326_v0  ;;  %244 = vmatprep.mubr.msk.f32.mxu0 %vm327_vm1, %v326_v0  ;;  %50 = vst.msk [vmem:[#allocation2] sm:$0xff] %vm49_vm0, %v326_v0  ;;  %v68_v2 = vld [vmem:[#allocation6 + $0x78] sm:$0xff]  ;;  %v67_v3 = vld [vmem:[#allocation6 + $0x70] sm:$0xff]  ;;  %v142_v4 = vmul.f32 %v51_v1, %v51_v1  ;;  %v66_v5 = vld [vmem:[#allocation6 + $0x68] sm:$0xff]  ;;  %v328_v13 = vmov 0   ;;  %s329_s29 = smov [#allocation8]  }
  0x1c   :  { %213 = vmatpush3.msra.mxu0 %v68_v2  ;;  %v65_v6 = vld [vmem:[#allocation6 + $0x60] sm:$0xff]  ;;  %v64_v7 = vld [vmem:[#allocation6 + $0x58] sm:$0xff]  ;;  %v63_v8 = vld [vmem:[#allocation6 + $0x50] sm:$0xff]  ;;  %255 = vset.pattern.permute.xlu0 %v328_v13  ;;  %s183_s30 = sshll.u32 %s329_s29, 4  ;;  %s184_s30 = int_to_ptr.vmem [resolvable:$true] %s183_s30 }
  0x1d   :  { %214 = vmatprep.subr.mxu0 %v326_v0  ;;  %143 = vadd.xlane.f32.xlu0 %v142_v4  ;;  %v62_v9 = vld [vmem:[#allocation6 + $0x48] sm:$0xff]  ;;  %v61_v10 = vld [vmem:[#allocation6 + $0x40] sm:$0xff]  ;;  %v60_v11 = vld [vmem:[#allocation6 + $0x38] sm:$0xff]  ;;  %s296_s5 = scalar_lea.vmem %s184_s30, 128  ;;  %p301_p11 = scmp.lt.s32.totalorder %s184_s30, %s184_s30 }
  0x1e   :  { %215 = vmatpush3.msra.mxu0 %v67_v3  ;;  %v59_v12 = vld [vmem:[#allocation6 + $0x30] sm:$0xff]  ;;  %v58_v14 = vld [vmem:[#allocation6 + $0x28] sm:$0xff]  ;;  %v57_v15 = vld [vmem:[#allocation6 + $0x20] sm:$0xff]  ;;  %p297_p10 = scmp.ne.s32.totalorder %s184_s30, %s296_s5  ;;  %p302_p12 = scmp.lt.s32.totalorder %s296_s5, %s296_s5 }
  0x1f   :  { %216 = vmatprep.subr.mxu0 %v326_v0  ;;  %v56_v16 = vld [vmem:[#allocation6 + $0x18] sm:$0xff]  ;;  %v55_v17 = vld [vmem:[#allocation6 + $0x10] sm:$0xff]  ;;  %v54_v18 = vld [vmem:[#allocation6 + $0x8] sm:$0xff] }
  0x20   :  { %217 = vmatpush3.msra.mxu0 %v66_v5  ;;  %v53_v19 = vld [vmem:[#allocation6] sm:$0xff]  ;;  %v193_v27 = vld [vmem:[%s374_s2] ss:$0 sm:$0xff]  ;;  %p303_p13 = por %p302_p12, %p301_p11 }
  0x21   :  { %218 = vmatprep.subr.mxu0 %v326_v0  ;;  %v194_v30 = vld [vmem:[%s375_s3] ss:$0 sm:$0xff] }
  0x22   :  { %219 = vmatpush3.msra.mxu0 %v65_v6  ;;  %v141_v20 = vld [vmem:[#allocation2] sm:$0xff]  ;;  %p304_p0 = pnand %p303_p13, %p297_p10 }
  0x23   :  { %220 = vmatprep.subr.mxu0 %v326_v0 }
  0x24   :  { %221 = vmatpush3.msra.mxu0 %v64_v7 }
  0x25   :  { %222 = vmatprep.subr.mxu0 %v326_v0 }
  0x26   :  { %223 = vmatpush3.msra.mxu0 %v63_v8 }
  0x27   :  { %224 = vmatprep.subr.mxu0 %v326_v0 }
  0x28   :  { %225 = vmatpush3.msra.mxu0 %v62_v9 }
  0x29   :  { %226 = vmatprep.subr.mxu0 %v326_v0 }
  0x2a   :  { %227 = vmatpush3.msra.mxu0 %v61_v10 }
  0x2b   :  { %228 = vmatprep.subr.mxu0 %v326_v0 }
  0x2c   :  { %229 = vmatpush3.msra.mxu0 %v60_v11 }
  0x2d   :  { %230 = vmatprep.subr.mxu0 %v326_v0 }
  0x2e   :  { %231 = vmatpush3.msra.mxu0 %v59_v12 }
  0x2f   :  { %232 = vmatprep.subr.mxu0 %v326_v0 }
  0x30   :  { %233 = vmatpush3.msra.mxu0 %v58_v14 }
  0x31   :  { %234 = vmatprep.subr.mxu0 %v326_v0 }
  0x32   :  { %235 = vmatpush3.msra.mxu0 %v57_v15 }
  0x33   :  { %236 = vmatprep.subr.mxu0 %v326_v0 }
  0x34   :  { %237 = vmatpush3.msra.mxu0 %v56_v16 }
  0x35   :  { %238 = vmatprep.subr.mxu0 %v326_v0 }
  0x36   :  { %239 = vmatpush3.msra.mxu0 %v55_v17 }
  0x37   :  { %240 = vmatprep.subr.mxu0 %v326_v0 }
  0x38   :  { %241 = vmatpush3.msra.mxu0 %v54_v18 }
  0x39   :  { %242 = vmatprep.subr.mxu0 %v326_v0 }
  0x3a   :  { %243 = vmatpush3.msra.mxu0 %v53_v19 }
  0x3b   :  { %245 = vmatmul.mubr.f32.vlgmr.msra.gmra.mxu0 %v51_v1 }
  0xa6   :  { %v144_v21 = vpop.xlane.xlu0 %143 }
  0xa7   :  { %v145_v22 = vadd.f32 %v144_v21, %v141_v20 }
  0xa9   :  { %147 = vst.msk [vmem:[#allocation2] sm:$0xff] %vm49_vm0, %v145_v22 }
  0xb0   :  { %v154_v23 = vld [vmem:[#allocation2] sm:$0xff] }
  0xb1   :  { %157 = vperm.xlu0 %255, %v154_v23  }
  0xfb   :  { %v135_v24 = vpop.f32.mrf.mxu0 }
  0xfc   :  { %v153_v26 = vmul.f32 2.0, %v135_v24 }
  0xfd   :  { %v246_v25 = vpop.f32.mrf.mxu0 }
 0x12c   :  { %v158_v28 = vpop.permute.xlu0 %157 }
 0x12d   :  { %v160_v29 = vsub.f32 %v153_v26, %v158_v28 }
 0x12f   :  { %v167_v31 = vmul.f32 %v193_v27, %v160_v29 }
 0x131   :  { %v175_v32 = vadd.f32 %v194_v30, %v167_v31 }
 0x133   :  { %176 = vst [vmem:[#allocation8] sm:$0xff] %v175_v32 }
 0x134   :  { %307 = shalt.err (!%p304_p0)
}
 0x135   :  { %186 = dma.vmem_to_hbm [thread:$0]  %s184_s30, 128, %s376_s4, [#allocation5]  }
 0x136   :  { %320 = dma.done.wait [#allocation5], 128  }
 0x137   :  { %321 = vsyncadd [#allocation5], 4294967168 }
 0x138   :  { %190 = vsyncpa [#allocation4], 1 }
 0x139   :  { %191 = vsyncpa [#allocation7], 1 }
 0x13a   :  { %192 = vsyncpa [#allocation5], 1 }

</bundles_post_ra>
